<compile_context>
chip_gen: v6e
topology: v6e:2x2x1
jax: 0.10.0
libtpu: 0.0.40
codegen_flags: <defaults>
</compile_context>

<pallas_src>
import functools

import jax
import jax.numpy as jnp
from jax.experimental import pallas as pl
from jax.experimental.pallas import tpu as pltpu


_MATMUL_DTYPE = jnp.bfloat16      # MXU operand dtype; accumulation is f32.


# ---------------- in-kernel helpers ----------------

def _mm_bf16(a_f32, w_lowp):
    """(M, C_in) f32 activation x (C_in, C_out) bf16 weight -> (M, C_out) f32.

    Operands are rounded to bf16, products/accumulation are f32.  A
    contraction dim of 1 is lowered to a VPU broadcast-FMA (keeps the MXU free
    and avoids a 1-deep systolic contraction).
    """
    a16 = a_f32.astype(_MATMUL_DTYPE)
    if a16.shape[-1] == 1:
        return a16.astype(jnp.float32) * w_lowp.astype(jnp.float32)
    return jnp.dot(a16, w_lowp, preferred_element_type=jnp.float32)


def _causal_conv_relu(slab_ref, h, w_ref, b_ref, *, K, dilation, L, pad8):
    """Dilated causal Conv1d + chomp + bias + ReLU for one batch item.

    h:        (L, C_in) f32 value (time on sublanes, channels on lanes).
    w_ref:    (K, C_in, C_out) bf16 weight ref.
    b_ref:    (1, C_out) f32 bias ref.
    slab_ref: shared (pad8 + L, C_max) f32 VMEM staging slab whose first pad8
              rows are already zero (zeroed once per grid step).
    """
    c_in = h.shape[-1]
    pad = (K - 1) * dilation
    base = pad8 - pad                       # tap 0 starts here (>= 0)
    # Aligned store of the conv input; the K taps are unaligned loads.
    slab_ref[pl.ds(pad8, L), pl.ds(0, c_in)] = h
    acc = None
    for j in range(K):
        tap = slab_ref[pl.ds(base + j * dilation, L), pl.ds(0, c_in)]
        contrib = _mm_bf16(tap, w_ref[j])
        acc = contrib if acc is None else acc + contrib
    return jnp.maximum(acc + b_ref[...], 0.0)


def _tcn_fused_kernel(*refs, layer_meta, L, pad8):
    """Whole TCNModel forward for one batch item (all TemporalBlocks + head),
    with every intermediate activation kept on-chip."""
    it = iter(refs)
    x_ref = next(it)
    per_layer = []
    for meta in layer_meta:
        n = 6 if meta["has_down"] else 4
        per_layer.append(tuple(next(it) for _ in range(n)))
    wh_ref = next(it)
    wx_ref = next(it)
    bo_ref = next(it)
    o_ref = next(it)
    slab_ref = next(it)

    # Zero the shared causal-pad rows ONCE per grid step; every conv stages
    # its input at offset pad8, so these rows are never overwritten.  Kept
    # unconditional (not program_id==0 gated) so it is correct under
    # "parallel" sharding where each core has a private scratch copy.
    if pad8 > 0:
        slab_ref[pl.ds(0, pad8), :] = jnp.zeros(
            (pad8, slab_ref.shape[-1]), slab_ref.dtype)

    x_val = x_ref[...]                       # (L, C_in0) f32
    h = x_val
    for meta, lrefs in zip(layer_meta, per_layer):
        if meta["has_down"]:
            w1, b1, w2, b2, wd, bd = lrefs
        else:
            w1, b1, w2, b2 = lrefs
            wd = bd = None
        K, d = meta["K"], meta["dilation"]
        h_in = h
        h1 = _causal_conv_relu(slab_ref, h_in, w1, b1,
                               K=K, dilation=d, L=L, pad8=pad8)
        h2 = _causal_conv_relu(slab_ref, h1, w2, b2,
                               K=K, dilation=d, L=L, pad8=pad8)
        if wd is not None:                   # fused 1x1 downsample conv
            res = _mm_bf16(h_in, wd[0]) + bd[...]
        else:                                # identity residual
            res = h_in
        h = jnp.maximum(h2 + res, 0.0)

    # Head: cat([tcn(x), x], channels) @ W.T + b == h @ Wh + x @ Wx + b,
    # so the concatenated intermediate never materialises.
    out = _mm_bf16(h, wh_ref[...]) + _mm_bf16(x_val, wx_ref[...]) + bo_ref[...]
    o_ref[...] = out.astype(o_ref.dtype)


# ---------------- model forward (single fused pallas_call) ----------------

def tcn_model_forward(params, x):
    """x: (N, L, C_in) float32 -> (N, L, output_size) float32.

    PyTorch-layout output (N, output_size, L) is transpose(1, 2) of this.
    """
    N, L, c_in0 = x.shape
    out_dim = params["w_h"].shape[-1]

    args = [x]
    in_specs = [pl.BlockSpec((pl.Squeezed(), L, c_in0), lambda n: (n, 0, 0))]
    layer_meta = []
    pad8 = 0
    c_max = c_in0
    for layer in params["tcn"]:
        K, _, c_out = layer["w1"].shape
        d = layer["dilation"]
        pad = (K - 1) * d
        pad8 = max(pad8, ((pad + 7) // 8) * 8)
        c_max = max(c_max, c_out)
        has_down = layer["wd"] is not None
        layer_meta.append(dict(K=K, dilation=d, has_down=has_down))
        args += [layer["w1"], layer["b1"], layer["w2"], layer["b2"]]
        in_specs += [
            pl.BlockSpec(layer["w1"].shape, lambda n: (0, 0, 0)),
            pl.BlockSpec(layer["b1"].shape, lambda n: (0, 0)),
            pl.BlockSpec(layer["w2"].shape, lambda n: (0, 0, 0)),
            pl.BlockSpec(layer["b2"].shape, lambda n: (0, 0)),
        ]
        if has_down:
            args += [layer["wd"], layer["bd"]]
            in_specs += [
                pl.BlockSpec(layer["wd"].shape, lambda n: (0, 0, 0)),
                pl.BlockSpec(layer["bd"].shape, lambda n: (0, 0)),
            ]
    args += [params["w_h"], params["w_x"], params["b_out"]]
    in_specs += [
        pl.BlockSpec(params["w_h"].shape, lambda n: (0, 0)),
        pl.BlockSpec(params["w_x"].shape, lambda n: (0, 0)),
        pl.BlockSpec(params["b_out"].shape, lambda n: (0, 0)),
    ]

    kernel = functools.partial(_tcn_fused_kernel,
                               layer_meta=tuple(layer_meta), L=L, pad8=pad8)

    return pl.pallas_call(
        kernel,
        out_shape=jax.ShapeDtypeStruct((N, L, out_dim), jnp.float32),
        grid=(N,),
        in_specs=in_specs,
        out_specs=pl.BlockSpec((pl.Squeezed(), L, out_dim),
                               lambda n: (n, 0, 0)),
        scratch_shapes=[pltpu.VMEM((pad8 + L, c_max), jnp.float32)],
        compiler_params=pltpu.CompilerParams(
            dimension_semantics=("parallel",),
            # Above the 16/32 MiB scoped defaults, still below every
            # generation's physical VMEM (raise further on v5e/v6e for long L).
            vmem_limit_bytes=48 * 1024 * 1024),
    )(*args)


# ---------------- parameters (deterministic, in-script) ----------------

def _weight_norm_eff(v, g):
    # torch weight_norm(dim=0): W = g * v / ||v||, norm per output channel.
    norm = jnp.sqrt(jnp.sum(v * v, axis=(1, 2), keepdims=True))
    return (g[:, None, None] / norm) * v


def init_params(key, input_size, output_size, num_channels, kernel_size):
    layers = []
    c_in = input_size
    for i, c_out in enumerate(num_channels):
        key, k1, k2, k3, k4, k5, k6, k7, k8 = jax.random.split(key, 9)
        v1 = 0.01 * jax.random.normal(k1, (c_out, c_in, kernel_size), jnp.float32)
        g1 = jax.random.uniform(k2, (c_out,), jnp.float32, 0.5, 1.5)
        b1 = 0.01 * jax.random.normal(k3, (c_out,), jnp.float32)
        v2 = 0.01 * jax.random.normal(k4, (c_out, c_out, kernel_size), jnp.float32)
        g2 = jax.random.uniform(k5, (c_out,), jnp.float32, 0.5, 1.5)
        b2 = 0.01 * jax.random.normal(k6, (c_out,), jnp.float32)
        # Kernel layout: (K, C_in, C_out); MXU operands stored in bf16.
        w1 = jnp.transpose(_weight_norm_eff(v1, g1), (2, 1, 0)).astype(_MATMUL_DTYPE)
        w2 = jnp.transpose(_weight_norm_eff(v2, g2), (2, 1, 0)).astype(_MATMUL_DTYPE)
        layer = dict(dilation=2 ** i,
                     w1=w1, b1=b1.reshape(1, -1),
                     w2=w2, b2=b2.reshape(1, -1),
                     wd=None, bd=None)
        if c_in != c_out:
            wd = 0.01 * jax.random.normal(k7, (c_out, c_in, 1), jnp.float32)
            bd = 0.01 * jax.random.normal(k8, (c_out,), jnp.float32)
            layer["wd"] = jnp.transpose(wd, (2, 1, 0)).astype(_MATMUL_DTYPE)
            layer["bd"] = bd.reshape(1, -1)
        layers.append(layer)
        c_in = c_out

    key, kw, kb = jax.random.split(key, 3)
    # Final nn.Linear(num_channels[-1] + 1, output_size) applied to the channel
    # axis of cat([tcn(x), x], channels); split into the h-part and x-part.
    w_lin = 0.1 * jax.random.normal(
        kw, (output_size, num_channels[-1] + input_size), jnp.float32)
    b_lin = 0.1 * jax.random.normal(kb, (output_size,), jnp.float32)
    w_h = jnp.transpose(w_lin[:, :num_channels[-1]], (1, 0)).astype(_MATMUL_DTYPE)
    w_x = jnp.transpose(w_lin[:, num_channels[-1]:], (1, 0)).astype(_MATMUL_DTYPE)
    b_out = b_lin.reshape(1, -1)
    # NOTE: self.global_residual (Conv1d) is defined in __init__ but never used
    # in TCNModel.forward, so no parameters are needed for it here.
    return dict(tcn=layers, w_h=w_h, w_x=w_x, b_out=b_out)


# ---------------- pure-JAX reference for verification ----------------
# Mirrors the kernel numerics: bf16-rounded matmul operands, f32 accumulation.

_REF_PREC = jax.lax.Precision.HIGHEST


def _bf16_round(x):
    return x.astype(jnp.bfloat16).astype(jnp.float32)


def _ref_causal_conv(x, w, b, dilation):
    N, L, _ = x.shape
    K = w.shape[0]
    pad = (K - 1) * dilation
    xp = jnp.pad(_bf16_round(x), ((0, 0), (pad, 0), (0, 0)))
    wf = w.astype(jnp.float32)
    out = jnp.zeros((N, L, w.shape[-1]), jnp.float32)
    for j in range(K):
        out = out + jnp.einsum("nlc,cd->nld",
                               xp[:, j * dilation:j * dilation + L, :], wf[j],
                               precision=_REF_PREC)
    return out + b[None]


def ref_forward(params, x):
    h = x
    for layer in params["tcn"]:
        d = layer["dilation"]
        h_in = h
        h1 = jnp.maximum(_ref_causal_conv(h_in, layer["w1"], layer["b1"], d), 0.0)
        h2 = jnp.maximum(_ref_causal_conv(h1, layer["w2"], layer["b2"], d), 0.0)
        if layer["wd"] is not None:
            res = (jnp.einsum("nlc,cd->nld", _bf16_round(h_in),
                              layer["wd"][0].astype(jnp.float32),
                              precision=_REF_PREC)
                   + layer["bd"][None])
        else:
            res = h_in
        h = jnp.maximum(h2 + res, 0.0)
    out = (jnp.einsum("nlc,cd->nld", _bf16_round(h),
                      params["w_h"].astype(jnp.float32), precision=_REF_PREC)
           + jnp.einsum("nlc,cd->nld", _bf16_round(x),
                        params["w_x"].astype(jnp.float32), precision=_REF_PREC)
           + params["b_out"][None])
    return out


if __name__ == "__main__":
    key = jax.random.PRNGKey(0)
    N, L = 2, 16
    input_size, output_size = 1, 1   # Linear(num_channels[-1]+1, ...) => C_in must be 1
    num_channels = [8, 8]
    kernel_size = 2

    pkey, xkey = jax.random.split(key)
    params = init_params(pkey, input_size, output_size, num_channels, kernel_size)

    # PyTorch-style input (N, C_in, L) -> kernel layout (N, L, C_in)
    x_ncl = jax.random.normal(xkey, (N, input_size, L), dtype=jnp.float32)
    x = jnp.transpose(x_ncl, (0, 2, 1))

    out = tcn_model_forward(params, x)       # (N, L, output_size)
    out = jax.block_until_ready(out)

    ref = ref_forward(params, x)
    assert out.shape == (N, L, output_size)
    assert jnp.allclose(out, ref, rtol=1e-3, atol=1e-5), "mismatch vs reference"

    # PyTorch-layout output would be jnp.transpose(out, (0, 2, 1))  # (N, out, L)
    print("KERNEL_OK")
</pallas_src>

<mosaic_0001>
module attributes {stable_mosaic.version = 11 : i64} {
  func.func @_tcn_fused_kernel(%arg0: i32, %arg1: memref<1x16x1xf32, #tpu.memory_space<vmem>>, %arg2: memref<2x1x8xbf16, #tpu.memory_space<vmem>>, %arg3: memref<1x8xf32, #tpu.memory_space<vmem>>, %arg4: memref<2x8x8xbf16, #tpu.memory_space<vmem>>, %arg5: memref<1x8xf32, #tpu.memory_space<vmem>>, %arg6: memref<1x1x8xbf16, #tpu.memory_space<vmem>>, %arg7: memref<1x8xf32, #tpu.memory_space<vmem>>, %arg8: memref<2x8x8xbf16, #tpu.memory_space<vmem>>, %arg9: memref<1x8xf32, #tpu.memory_space<vmem>>, %arg10: memref<2x8x8xbf16, #tpu.memory_space<vmem>>, %arg11: memref<1x8xf32, #tpu.memory_space<vmem>>, %arg12: memref<8x1xbf16, #tpu.memory_space<vmem>>, %arg13: memref<1x1xbf16, #tpu.memory_space<vmem>>, %arg14: memref<1x1xf32, #tpu.memory_space<vmem>>, %arg15: memref<1x16x1xf32, #tpu.memory_space<vmem>>, %arg16: memref<24x8xf32, #tpu.memory_space<vmem>>) attributes {dimension_semantics = [#tpu.dimension_semantics<parallel>], iteration_bounds = array<i64: 2>, scalar_prefetch = 0 : i64, scratch_operands = 1 : i64, tpu.core_type = #tpu.core_type<tc>, window_params = [{transform_indices = @transform_0, window_bounds = array<i64: 1, 16, 1>}, {pipeline_mode = #tpu.pipeline_mode<synchronous>, transform_indices = @transform_1, window_bounds = array<i64: 2, 1, 8>}, {pipeline_mode = #tpu.pipeline_mode<synchronous>, transform_indices = @transform_2, window_bounds = array<i64: 1, 8>}, {pipeline_mode = #tpu.pipeline_mode<synchronous>, transform_indices = @transform_3, window_bounds = array<i64: 2, 8, 8>}, {pipeline_mode = #tpu.pipeline_mode<synchronous>, transform_indices = @transform_4, window_bounds = array<i64: 1, 8>}, {pipeline_mode = #tpu.pipeline_mode<synchronous>, transform_indices = @transform_5, window_bounds = array<i64: 1, 1, 8>}, {pipeline_mode = #tpu.pipeline_mode<synchronous>, transform_indices = @transform_6, window_bounds = array<i64: 1, 8>}, {pipeline_mode = #tpu.pipeline_mode<synchronous>, transform_indices = @transform_7, window_bounds = array<i64: 2, 8, 8>}, {pipeline_mode = #tpu.pipeline_mode<synchronous>, transform_indices = @transform_8, window_bounds = array<i64: 1, 8>}, {pipeline_mode = #tpu.pipeline_mode<synchronous>, transform_indices = @transform_9, window_bounds = array<i64: 2, 8, 8>}, {pipeline_mode = #tpu.pipeline_mode<synchronous>, transform_indices = @transform_10, window_bounds = array<i64: 1, 8>}, {pipeline_mode = #tpu.pipeline_mode<synchronous>, transform_indices = @transform_11, window_bounds = array<i64: 8, 1>}, {pipeline_mode = #tpu.pipeline_mode<synchronous>, transform_indices = @transform_12, window_bounds = array<i64: 1, 1>}, {pipeline_mode = #tpu.pipeline_mode<synchronous>, transform_indices = @transform_13, window_bounds = array<i64: 1, 1>}, {transform_indices = @transform_14, window_bounds = array<i64: 1, 16, 1>}]} {
    %cst = arith.constant 0.000000e+00 : f32
    %0 = vector.broadcast %cst : f32 to vector<8x8xf32>
    %c0 = arith.constant 0 : index
    %c0_0 = arith.constant 0 : index
    %1 = vector.load %arg16[%c0, %c0_0] : memref<24x8xf32, #tpu.memory_space<vmem>>, vector<8x8xf32>
    tpu.vector_store %arg16[%c0, %c0_0], %0 {strides = array<i32>} : memref<24x8xf32, #tpu.memory_space<vmem>>, vector<8x8xf32>,
    %c0_1 = arith.constant 0 : index
    %c0_2 = arith.constant 0 : index
    %c0_3 = arith.constant 0 : index
    %2 = vector.load %arg1[%c0_1, %c0_2, %c0_3] : memref<1x16x1xf32, #tpu.memory_space<vmem>>, vector<1x16x1xf32>
    %3 = vector.shape_cast %2 : vector<1x16x1xf32> to vector<16x1xf32>
    %c8 = arith.constant 8 : index
    %c0_4 = arith.constant 0 : index
    %4 = vector.load %arg16[%c8, %c0_4] : memref<24x8xf32, #tpu.memory_space<vmem>>, vector<16x1xf32>
    tpu.vector_store %arg16[%c8, %c0_4], %3 {strides = array<i32>} : memref<24x8xf32, #tpu.memory_space<vmem>>, vector<16x1xf32>,
    %c7 = arith.constant 7 : index
    %c0_5 = arith.constant 0 : index
    %5 = vector.load %arg16[%c7, %c0_5] : memref<24x8xf32, #tpu.memory_space<vmem>>, vector<16x1xf32>
    %c0_6 = arith.constant 0 : index
    %c0_7 = arith.constant 0 : index
    %c0_8 = arith.constant 0 : index
    %6 = vector.load %arg2[%c0_6, %c0_7, %c0_8] : memref<2x1x8xbf16, #tpu.memory_space<vmem>>, vector<1x1x8xbf16>
    %7 = vector.shape_cast %6 : vector<1x1x8xbf16> to vector<1x8xbf16>
    %8 = arith.truncf %5 : vector<16x1xf32> to vector<16x1xbf16>
    %9 = arith.extf %8 : vector<16x1xbf16> to vector<16x1xf32>
    %10 = arith.extf %7 : vector<1x8xbf16> to vector<1x8xf32>
    %11 = vector.broadcast %9 : vector<16x1xf32> to vector<16x8xf32>
    %12 = vector.broadcast %10 : vector<1x8xf32> to vector<16x8xf32>
    %13 = arith.mulf %11, %12 : vector<16x8xf32>
    %c8_9 = arith.constant 8 : index
    %c0_10 = arith.constant 0 : index
    %14 = vector.load %arg16[%c8_9, %c0_10] : memref<24x8xf32, #tpu.memory_space<vmem>>, vector<16x1xf32>
    %c1 = arith.constant 1 : index
    %c0_11 = arith.constant 0 : index
    %c0_12 = arith.constant 0 : index
    %15 = vector.load %arg2[%c1, %c0_11, %c0_12] : memref<2x1x8xbf16, #tpu.memory_space<vmem>>, vector<1x1x8xbf16>
    %16 = vector.shape_cast %15 : vector<1x1x8xbf16> to vector<1x8xbf16>
    %17 = arith.truncf %14 : vector<16x1xf32> to vector<16x1xbf16>
    %18 = arith.extf %17 : vector<16x1xbf16> to vector<16x1xf32>
    %19 = arith.extf %16 : vector<1x8xbf16> to vector<1x8xf32>
    %20 = vector.broadcast %18 : vector<16x1xf32> to vector<16x8xf32>
    %21 = vector.broadcast %19 : vector<1x8xf32> to vector<16x8xf32>
    %22 = arith.mulf %20, %21 : vector<16x8xf32>
    %23 = arith.addf %13, %22 : vector<16x8xf32>
    %c0_13 = arith.constant 0 : index
    %c0_14 = arith.constant 0 : index
    %24 = vector.load %arg3[%c0_13, %c0_14] : memref<1x8xf32, #tpu.memory_space<vmem>>, vector<1x8xf32>
    %25 = vector.broadcast %24 : vector<1x8xf32> to vector<16x8xf32>
    %26 = arith.addf %23, %25 : vector<16x8xf32>
    %cst_15 = arith.constant 0.000000e+00 : f32
    %27 = vector.broadcast %cst_15 : f32 to vector<16x8xf32>
    %28 = arith.maximumf %26, %27 : vector<16x8xf32>
    %c8_16 = arith.constant 8 : index
    %c0_17 = arith.constant 0 : index
    %29 = vector.load %arg16[%c8_16, %c0_17] : memref<24x8xf32, #tpu.memory_space<vmem>>, vector<16x8xf32>
    tpu.vector_store %arg16[%c8_16, %c0_17], %28 {strides = array<i32>} : memref<24x8xf32, #tpu.memory_space<vmem>>, vector<16x8xf32>,
    %c7_18 = arith.constant 7 : index
    %c0_19 = arith.constant 0 : index
    %30 = vector.load %arg16[%c7_18, %c0_19] : memref<24x8xf32, #tpu.memory_space<vmem>>, vector<16x8xf32>
    %c0_20 = arith.constant 0 : index
    %c0_21 = arith.constant 0 : index
    %c0_22 = arith.constant 0 : index
    %31 = vector.load %arg4[%c0_20, %c0_21, %c0_22] : memref<2x8x8xbf16, #tpu.memory_space<vmem>>, vector<1x8x8xbf16>
    %32 = vector.shape_cast %31 : vector<1x8x8xbf16> to vector<8x8xbf16>
    %33 = arith.truncf %30 : vector<16x8xf32> to vector<16x8xbf16>
    %cst_23 = arith.constant dense<0.000000e+00> : vector<16x8xf32>
    %34 = tpu.matmul %33, %32, %cst_23 {dimension_numbers = #tpu.dot_dimension_numbers<[1], [0], [0], [1], [0, 0, 1, 1], [], []>} : vector<16x8xbf16>, vector<8x8xbf16>, vector<16x8xf32> -> vector<16x8xf32>
    %c8_24 = arith.constant 8 : index
    %c0_25 = arith.constant 0 : index
    %35 = vector.load %arg16[%c8_24, %c0_25] : memref<24x8xf32, #tpu.memory_space<vmem>>, vector<16x8xf32>
    %c1_26 = arith.constant 1 : index
    %c0_27 = arith.constant 0 : index
    %c0_28 = arith.constant 0 : index
    %36 = vector.load %arg4[%c1_26, %c0_27, %c0_28] : memref<2x8x8xbf16, #tpu.memory_space<vmem>>, vector<1x8x8xbf16>
    %37 = vector.shape_cast %36 : vector<1x8x8xbf16> to vector<8x8xbf16>
    %38 = arith.truncf %35 : vector<16x8xf32> to vector<16x8xbf16>
    %cst_29 = arith.constant dense<0.000000e+00> : vector<16x8xf32>
    %39 = tpu.matmul %38, %37, %cst_29 {dimension_numbers = #tpu.dot_dimension_numbers<[1], [0], [0], [1], [0, 0, 1, 1], [], []>} : vector<16x8xbf16>, vector<8x8xbf16>, vector<16x8xf32> -> vector<16x8xf32>
    %40 = arith.addf %34, %39 : vector<16x8xf32>
    %c0_30 = arith.constant 0 : index
    %c0_31 = arith.constant 0 : index
    %41 = vector.load %arg5[%c0_30, %c0_31] : memref<1x8xf32, #tpu.memory_space<vmem>>, vector<1x8xf32>
    %42 = vector.broadcast %41 : vector<1x8xf32> to vector<16x8xf32>
    %43 = arith.addf %40, %42 : vector<16x8xf32>
    %cst_32 = arith.constant 0.000000e+00 : f32
    %44 = vector.broadcast %cst_32 : f32 to vector<16x8xf32>
    %45 = arith.maximumf %43, %44 : vector<16x8xf32>
    %c0_33 = arith.constant 0 : index
    %c0_34 = arith.constant 0 : index
    %c0_35 = arith.constant 0 : index
    %46 = vector.load %arg6[%c0_33, %c0_34, %c0_35] : memref<1x1x8xbf16, #tpu.memory_space<vmem>>, vector<1x1x8xbf16>
    %47 = vector.shape_cast %46 : vector<1x1x8xbf16> to vector<1x8xbf16>
    %48 = arith.truncf %3 : vector<16x1xf32> to vector<16x1xbf16>
    %49 = arith.extf %48 : vector<16x1xbf16> to vector<16x1xf32>
    %50 = arith.extf %47 : vector<1x8xbf16> to vector<1x8xf32>
    %51 = vector.broadcast %49 : vector<16x1xf32> to vector<16x8xf32>
    %52 = vector.broadcast %50 : vector<1x8xf32> to vector<16x8xf32>
    %53 = arith.mulf %51, %52 : vector<16x8xf32>
    %c0_36 = arith.constant 0 : index
    %c0_37 = arith.constant 0 : index
    %54 = vector.load %arg7[%c0_36, %c0_37] : memref<1x8xf32, #tpu.memory_space<vmem>>, vector<1x8xf32>
    %55 = vector.broadcast %54 : vector<1x8xf32> to vector<16x8xf32>
    %56 = arith.addf %53, %55 : vector<16x8xf32>
    %57 = arith.addf %45, %56 : vector<16x8xf32>
    %cst_38 = arith.constant 0.000000e+00 : f32
    %58 = vector.broadcast %cst_38 : f32 to vector<16x8xf32>
    %59 = arith.maximumf %57, %58 : vector<16x8xf32>
    %c8_39 = arith.constant 8 : index
    %c0_40 = arith.constant 0 : index
    %60 = vector.load %arg16[%c8_39, %c0_40] : memref<24x8xf32, #tpu.memory_space<vmem>>, vector<16x8xf32>
    tpu.vector_store %arg16[%c8_39, %c0_40], %59 {strides = array<i32>} : memref<24x8xf32, #tpu.memory_space<vmem>>, vector<16x8xf32>,
    %c6 = arith.constant 6 : index
    %c0_41 = arith.constant 0 : index
    %61 = vector.load %arg16[%c6, %c0_41] : memref<24x8xf32, #tpu.memory_space<vmem>>, vector<16x8xf32>
    %c0_42 = arith.constant 0 : index
    %c0_43 = arith.constant 0 : index
    %c0_44 = arith.constant 0 : index
    %62 = vector.load %arg8[%c0_42, %c0_43, %c0_44] : memref<2x8x8xbf16, #tpu.memory_space<vmem>>, vector<1x8x8xbf16>
    %63 = vector.shape_cast %62 : vector<1x8x8xbf16> to vector<8x8xbf16>
    %64 = arith.truncf %61 : vector<16x8xf32> to vector<16x8xbf16>
    %cst_45 = arith.constant dense<0.000000e+00> : vector<16x8xf32>
    %65 = tpu.matmul %64, %63, %cst_45 {dimension_numbers = #tpu.dot_dimension_numbers<[1], [0], [0], [1], [0, 0, 1, 1], [], []>} : vector<16x8xbf16>, vector<8x8xbf16>, vector<16x8xf32> -> vector<16x8xf32>
    %c8_46 = arith.constant 8 : index
    %c0_47 = arith.constant 0 : index
    %66 = vector.load %arg16[%c8_46, %c0_47] : memref<24x8xf32, #tpu.memory_space<vmem>>, vector<16x8xf32>
    %c1_48 = arith.constant 1 : index
    %c0_49 = arith.constant 0 : index
    %c0_50 = arith.constant 0 : index
    %67 = vector.load %arg8[%c1_48, %c0_49, %c0_50] : memref<2x8x8xbf16, #tpu.memory_space<vmem>>, vector<1x8x8xbf16>
    %68 = vector.shape_cast %67 : vector<1x8x8xbf16> to vector<8x8xbf16>
    %69 = arith.truncf %66 : vector<16x8xf32> to vector<16x8xbf16>
    %cst_51 = arith.constant dense<0.000000e+00> : vector<16x8xf32>
    %70 = tpu.matmul %69, %68, %cst_51 {dimension_numbers = #tpu.dot_dimension_numbers<[1], [0], [0], [1], [0, 0, 1, 1], [], []>} : vector<16x8xbf16>, vector<8x8xbf16>, vector<16x8xf32> -> vector<16x8xf32>
    %71 = arith.addf %65, %70 : vector<16x8xf32>
    %c0_52 = arith.constant 0 : index
    %c0_53 = arith.constant 0 : index
    %72 = vector.load %arg9[%c0_52, %c0_53] : memref<1x8xf32, #tpu.memory_space<vmem>>, vector<1x8xf32>
    %73 = vector.broadcast %72 : vector<1x8xf32> to vector<16x8xf32>
    %74 = arith.addf %71, %73 : vector<16x8xf32>
    %cst_54 = arith.constant 0.000000e+00 : f32
    %75 = vector.broadcast %cst_54 : f32 to vector<16x8xf32>
    %76 = arith.maximumf %74, %75 : vector<16x8xf32>
    %c8_55 = arith.constant 8 : index
    %c0_56 = arith.constant 0 : index
    %77 = vector.load %arg16[%c8_55, %c0_56] : memref<24x8xf32, #tpu.memory_space<vmem>>, vector<16x8xf32>
    tpu.vector_store %arg16[%c8_55, %c0_56], %76 {strides = array<i32>} : memref<24x8xf32, #tpu.memory_space<vmem>>, vector<16x8xf32>,
    %c6_57 = arith.constant 6 : index
    %c0_58 = arith.constant 0 : index
    %78 = vector.load %arg16[%c6_57, %c0_58] : memref<24x8xf32, #tpu.memory_space<vmem>>, vector<16x8xf32>
    %c0_59 = arith.constant 0 : index
    %c0_60 = arith.constant 0 : index
    %c0_61 = arith.constant 0 : index
    %79 = vector.load %arg10[%c0_59, %c0_60, %c0_61] : memref<2x8x8xbf16, #tpu.memory_space<vmem>>, vector<1x8x8xbf16>
    %80 = vector.shape_cast %79 : vector<1x8x8xbf16> to vector<8x8xbf16>
    %81 = arith.truncf %78 : vector<16x8xf32> to vector<16x8xbf16>
    %cst_62 = arith.constant dense<0.000000e+00> : vector<16x8xf32>
    %82 = tpu.matmul %81, %80, %cst_62 {dimension_numbers = #tpu.dot_dimension_numbers<[1], [0], [0], [1], [0, 0, 1, 1], [], []>} : vector<16x8xbf16>, vector<8x8xbf16>, vector<16x8xf32> -> vector<16x8xf32>
    %c8_63 = arith.constant 8 : index
    %c0_64 = arith.constant 0 : index
    %83 = vector.load %arg16[%c8_63, %c0_64] : memref<24x8xf32, #tpu.memory_space<vmem>>, vector<16x8xf32>
    %c1_65 = arith.constant 1 : index
    %c0_66 = arith.constant 0 : index
    %c0_67 = arith.constant 0 : index
    %84 = vector.load %arg10[%c1_65, %c0_66, %c0_67] : memref<2x8x8xbf16, #tpu.memory_space<vmem>>, vector<1x8x8xbf16>
    %85 = vector.shape_cast %84 : vector<1x8x8xbf16> to vector<8x8xbf16>
    %86 = arith.truncf %83 : vector<16x8xf32> to vector<16x8xbf16>
    %cst_68 = arith.constant dense<0.000000e+00> : vector<16x8xf32>
    %87 = tpu.matmul %86, %85, %cst_68 {dimension_numbers = #tpu.dot_dimension_numbers<[1], [0], [0], [1], [0, 0, 1, 1], [], []>} : vector<16x8xbf16>, vector<8x8xbf16>, vector<16x8xf32> -> vector<16x8xf32>
    %88 = arith.addf %82, %87 : vector<16x8xf32>
    %c0_69 = arith.constant 0 : index
    %c0_70 = arith.constant 0 : index
    %89 = vector.load %arg11[%c0_69, %c0_70] : memref<1x8xf32, #tpu.memory_space<vmem>>, vector<1x8xf32>
    %90 = vector.broadcast %89 : vector<1x8xf32> to vector<16x8xf32>
    %91 = arith.addf %88, %90 : vector<16x8xf32>
    %cst_71 = arith.constant 0.000000e+00 : f32
    %92 = vector.broadcast %cst_71 : f32 to vector<16x8xf32>
    %93 = arith.maximumf %91, %92 : vector<16x8xf32>
    %94 = arith.addf %93, %59 : vector<16x8xf32>
    %cst_72 = arith.constant 0.000000e+00 : f32
    %95 = vector.broadcast %cst_72 : f32 to vector<16x8xf32>
    %96 = arith.maximumf %94, %95 : vector<16x8xf32>
    %c0_73 = arith.constant 0 : index
    %c0_74 = arith.constant 0 : index
    %97 = vector.load %arg12[%c0_73, %c0_74] : memref<8x1xbf16, #tpu.memory_space<vmem>>, vector<8x1xbf16>
    %98 = arith.truncf %96 : vector<16x8xf32> to vector<16x8xbf16>
    %cst_75 = arith.constant dense<0.000000e+00> : vector<16x1xf32>
    %99 = tpu.matmul %98, %97, %cst_75 {dimension_numbers = #tpu.dot_dimension_numbers<[1], [0], [0], [1], [0, 0, 1, 1], [], []>} : vector<16x8xbf16>, vector<8x1xbf16>, vector<16x1xf32> -> vector<16x1xf32>
    %c0_76 = arith.constant 0 : index
    %c0_77 = arith.constant 0 : index
    %100 = vector.load %arg13[%c0_76, %c0_77] : memref<1x1xbf16, #tpu.memory_space<vmem>>, vector<1x1xbf16>
    %101 = arith.truncf %3 : vector<16x1xf32> to vector<16x1xbf16>
    %102 = arith.extf %101 : vector<16x1xbf16> to vector<16x1xf32>
    %103 = arith.extf %100 : vector<1x1xbf16> to vector<1x1xf32>
    %104 = vector.broadcast %103 : vector<1x1xf32> to vector<16x1xf32>
    %105 = arith.mulf %102, %104 : vector<16x1xf32>
    %106 = arith.addf %99, %105 : vector<16x1xf32>
    %c0_78 = arith.constant 0 : index
    %c0_79 = arith.constant 0 : index
    %107 = vector.load %arg14[%c0_78, %c0_79] : memref<1x1xf32, #tpu.memory_space<vmem>>, vector<1x1xf32>
    %108 = vector.broadcast %107 : vector<1x1xf32> to vector<16x1xf32>
    %109 = arith.addf %106, %108 : vector<16x1xf32>
    %c0_80 = arith.constant 0 : index
    %c0_81 = arith.constant 0 : index
    %c0_82 = arith.constant 0 : index
    %110 = vector.load %arg15[%c0_80, %c0_81, %c0_82] : memref<1x16x1xf32, #tpu.memory_space<vmem>>, vector<1x16x1xf32>
    %111 = vector.shape_cast %110 : vector<1x16x1xf32> to vector<16x1xf32>
    %112 = vector.shape_cast %109 : vector<16x1xf32> to vector<1x16x1xf32>
    tpu.vector_store %arg15[%c0_80, %c0_81, %c0_82], %112 {strides = array<i32>} : memref<1x16x1xf32, #tpu.memory_space<vmem>>, vector<1x16x1xf32>,
    return
  }
  func.func @transform_0(%arg0: i32) -> (i32, i32, i32) {
    %c0_i32 = arith.constant 0 : i32
    %c0_i32_0 = arith.constant 0 : i32
    %c0_i32_1 = arith.constant 0 : i32
    return %arg0, %c0_i32, %c0_i32_0 : i32, i32, i32
  }
  func.func @transform_1(%arg0: i32) -> (i32, i32, i32) {
    %c0_i32 = arith.constant 0 : i32
    %c0_i32_0 = arith.constant 0 : i32
    %c0_i32_1 = arith.constant 0 : i32
    %c0_i32_2 = arith.constant 0 : i32
    return %c0_i32, %c0_i32_0, %c0_i32_1 : i32, i32, i32
  }
  func.func @transform_2(%arg0: i32) -> (i32, i32) {
    %c0_i32 = arith.constant 0 : i32
    %c0_i32_0 = arith.constant 0 : i32
    %c0_i32_1 = arith.constant 0 : i32
    return %c0_i32, %c0_i32_0 : i32, i32
  }
  func.func @transform_3(%arg0: i32) -> (i32, i32, i32) {
    %c0_i32 = arith.constant 0 : i32
    %c0_i32_0 = arith.constant 0 : i32
    %c0_i32_1 = arith.constant 0 : i32
    %c0_i32_2 = arith.constant 0 : i32
    return %c0_i32, %c0_i32_0, %c0_i32_1 : i32, i32, i32
  }
  func.func @transform_4(%arg0: i32) -> (i32, i32) {
    %c0_i32 = arith.constant 0 : i32
    %c0_i32_0 = arith.constant 0 : i32
    %c0_i32_1 = arith.constant 0 : i32
    return %c0_i32, %c0_i32_0 : i32, i32
  }
  func.func @transform_5(%arg0: i32) -> (i32, i32, i32) {
    %c0_i32 = arith.constant 0 : i32
    %c0_i32_0 = arith.constant 0 : i32
    %c0_i32_1 = arith.constant 0 : i32
    %c0_i32_2 = arith.constant 0 : i32
    return %c0_i32, %c0_i32_0, %c0_i32_1 : i32, i32, i32
  }
  func.func @transform_6(%arg0: i32) -> (i32, i32) {
    %c0_i32 = arith.constant 0 : i32
    %c0_i32_0 = arith.constant 0 : i32
    %c0_i32_1 = arith.constant 0 : i32
    return %c0_i32, %c0_i32_0 : i32, i32
  }
  func.func @transform_7(%arg0: i32) -> (i32, i32, i32) {
    %c0_i32 = arith.constant 0 : i32
    %c0_i32_0 = arith.constant 0 : i32
    %c0_i32_1 = arith.constant 0 : i32
    %c0_i32_2 = arith.constant 0 : i32
    return %c0_i32, %c0_i32_0, %c0_i32_1 : i32, i32, i32
  }
  func.func @transform_8(%arg0: i32) -> (i32, i32) {
    %c0_i32 = arith.constant 0 : i32
    %c0_i32_0 = arith.constant 0 : i32
    %c0_i32_1 = arith.constant 0 : i32
    return %c0_i32, %c0_i32_0 : i32, i32
  }
  func.func @transform_9(%arg0: i32) -> (i32, i32, i32) {
    %c0_i32 = arith.constant 0 : i32
    %c0_i32_0 = arith.constant 0 : i32
    %c0_i32_1 = arith.constant 0 : i32
    %c0_i32_2 = arith.constant 0 : i32
    return %c0_i32, %c0_i32_0, %c0_i32_1 : i32, i32, i32
  }
  func.func @transform_10(%arg0: i32) -> (i32, i32) {
    %c0_i32 = arith.constant 0 : i32
    %c0_i32_0 = arith.constant 0 : i32
    %c0_i32_1 = arith.constant 0 : i32
    return %c0_i32, %c0_i32_0 : i32, i32
  }
  func.func @transform_11(%arg0: i32) -> (i32, i32) {
    %c0_i32 = arith.constant 0 : i32
    %c0_i32_0 = arith.constant 0 : i32
    %c0_i32_1 = arith.constant 0 : i32
    return %c0_i32, %c0_i32_0 : i32, i32
  }
  func.func @transform_12(%arg0: i32) -> (i32, i32) {
    %c0_i32 = arith.constant 0 : i32
    %c0_i32_0 = arith.constant 0 : i32
    %c0_i32_1 = arith.constant 0 : i32
    return %c0_i32, %c0_i32_0 : i32, i32
  }
  func.func @transform_13(%arg0: i32) -> (i32, i32) {
    %c0_i32 = arith.constant 0 : i32
    %c0_i32_0 = arith.constant 0 : i32
    %c0_i32_1 = arith.constant 0 : i32
    return %c0_i32, %c0_i32_0 : i32, i32
  }
  func.func @transform_14(%arg0: i32) -> (i32, i32, i32) {
    %c0_i32 = arith.constant 0 : i32
    %c0_i32_0 = arith.constant 0 : i32
    %c0_i32_1 = arith.constant 0 : i32
    return %arg0, %c0_i32, %c0_i32_0 : i32, i32, i32
  }
}

</mosaic_0001>

<bundles_post_ra>
// kernel: tpu_custom_call.1
= control target key start
LH: loop header
LB: loop body
LE: loop exit
PB: predicated region body
PF: predicated region fallthrough
CT: control target
= control target key end

     0   :  { %s1256_s17 = smov 0   ;;  %s1404_s0 = inlined_call_operand.vmem [shape: f32[2,16,1], index: 0, kind: input, shape index: {}]   ;;  %s1405_s1 = inlined_call_operand.vmem [shape: bf16[2,1,8], index: 1, kind: input, shape index: {}]   ;;  %s1406_s2 = inlined_call_operand.vmem [shape: f32[1,8], index: 2, kind: input, shape index: {}]   ;;  %s1407_s3 = inlined_call_operand.vmem [shape: bf16[2,8,8], index: 3, kind: input, shape index: {}]   ;;  %s1408_s4 = inlined_call_operand.vmem [shape: f32[1,8], index: 4, kind: input, shape index: {}]   ;;  %s1409_s5 = inlined_call_operand.vmem [shape: bf16[1,1,8], index: 5, kind: input, shape index: {}]   ;;  %s1410_s6 = inlined_call_operand.vmem [shape: f32[1,8], index: 6, kind: input, shape index: {}]   ;;  %s1411_s7 = inlined_call_operand.vmem [shape: bf16[2,8,8], index: 7, kind: input, shape index: {}]   ;;  %s1412_s8 = inlined_call_operand.vmem [shape: f32[1,8], index: 8, kind: input, shape index: {}]   ;;  %s1413_s9 = inlined_call_operand.vmem [shape: bf16[2,8,8], index: 9, kind: input, shape index: {}]   ;;  %s1414_s10 = inlined_call_operand.vmem [shape: f32[1,8], index: 10, kind: input, shape index: {}]   ;;  %s1415_s11 = inlined_call_operand.vmem [shape: bf16[8,1], index: 11, kind: input, shape index: {}]   ;;  %s1416_s12 = inlined_call_operand.<no memory space> [shape: bf16[1,1], index: 12, kind: input, shape index: {}]   ;;  %s1417_s14 = inlined_call_operand.vmem [shape: f32[2,16,1], index: 14, kind: output, shape index: {}]   ;;  %s1418_s13 = inlined_call_operand.<no memory space> [shape: f32[1,1], index: 13, kind: input, shape index: {}]  }
   0x1   :  { %v19_v0 = vstv %s1416_s12  ;;  %v21_v1 = vstv %s1418_s13 }
   0x2   :  { %20 = vst [vmem:[#allocation3] sm:$0x1] %v19_v0  ;;  %22 = vst [vmem:[#allocation4] sm:$0x1] %v21_v1 }
   0x3 LB: > { %s1050_s18 = sadd.s32 4294967295, %s1170_s17   ;;  %p1054_p0 = scmp.ge.s32.totalorder %s1170_s17, 1  ;;  %s1170_s17 = sphi %s1256_s17, %s28_s17  }
   0x4   : > { %p416_p1 = scmp.lt.s32.totalorder %s1170_s17, 3 }
   0x6   : > { %p417_p2 = pnand %p1054_p0, %p416_p1 }
   0x7   : > { %p462_p3 = scmp.lt.s32.totalorder (!%p417_p2), %s1050_s18, 1 }
   0x8   : > { %420 = sbr.rel (%p417_p2) target bundleno = 1019 (0x3fb), region = 76 }
   0xd   : > { %vm473_vm0 = vcmask 64512   ;;  %v1172_v2 = vmov 0   ;;  %v1173_v3 = vmov 0.0   ;;  %s1420_s18 = smov (!%p462_p3, %s1050_s18), 1  ;;  %vm477_vm1 = vcmask 7168  }
   0xe   : > { %1147 = vset.pattern.permute.xlu0 %v1172_v2  ;;  %474 = vst.msk [vmem:[#allocation2] sm:$0xff] %vm473_vm0, %v1173_v3  ;;  %1094 = vmatprep.subr.bf16.mxu0 %v1173_v3  ;;  %s1078_s12 = sshll.u32 %s1420_s18, 4  ;;  %v1061_v12 = vld [vmem:[%s1407_s3 + $0x4] sm:$0xf]  ;;  %vm554_vm2 = vcmask 1043456   ;;  %vm1174_vm3 = vmmov 0   ;;  %v497_v20 = vlaneseq }
   0xf   : > { %1100 = vmatprep.subr.bf16.mxu1 %v1173_v3  ;;  %1158 = vset.pattern.permute.xlu1 %v1172_v2  ;;  %s466_s20 = scalar_lea.vmem %s1404_s0, %s1078_s12  ;;  %v544_v13 = vld [vmem:[%s1407_s3] sm:$0xf]  ;;  %v556_v14 = vsel %vm554_vm2, %v1061_v12, 0  ;;  %v1066_v52 = vld [vmem:[%s1411_s7 + $0x4] sm:$0xf]  ;;  %s471_s23 = scalar_lea.vmem %s1417_s14, %s1078_s12 }
  0x10   : > { %v475_v4 = vld [vmem:[%s466_s20] sm:$0xff]  ;;  %v476_v5 = vld [vmem:[%s466_s20 + $0x8] sm:$0xff]  ;;  %v603_v15 = vsel %vm554_vm2, %v544_v13, 0  ;;  %1096 = vmatprep.mubr.msk.bf16.mxu0 %vm1174_vm3, %v1173_v3  ;;  %1102 = vmatprep.mubr.msk.bf16.mxu1 %vm1174_vm3, %v1173_v3  ;;  %v498_v21 = vshrl.u32 %v497_v20, 7  ;;  %v706_v54 = vsel %vm554_vm2, %v1066_v52, 0 }
  0x11   : > { %478 = vst.msk [vmem:[#allocation2 + $0x8] sm:$0xff] %vm477_vm1, %v475_v4  ;;  %479 = vst.msk [vmem:[#allocation2 + $0x10] sm:$0xff] %vm477_vm1, %v476_v5  ;;  %1095 = vmatpush3.bf16.msra.mxu0 %v556_v14  ;;  %1101 = vmatpush3.bf16.msra.mxu1 %v603_v15  ;;  %v1292_v16 = vpack.c.bf16 %v476_v5, %v475_v4  ;;  %v482_v22 = vld [vmem:[%s1405_s1] sm:$0x1]  ;;  %v1059_v23 = vld [vmem:[%s1405_s1 + $0x1] sm:$0x1] }
  0x12   : > { %1106 = vmatprep.subr.bf16.mxu0 %v1173_v3  ;;  %1112 = vmatprep.subr.bf16.mxu1 %v1173_v3  ;;  %v486_v24 = vunpack.c.l.bf16 %v482_v22  ;;  %v1306_v25 = vsub.s32 0, %v498_v21  ;;  %v510_v26 = vunpack.c.l.bf16 %v1059_v23  ;;  %v1060_v39 = vld [vmem:[%s1406_s2] ss:$0 sm:$0xff] }
  0x13   : > { %v659_v17 = vunpack.c.l.bf16 %v1292_v16  ;;  %v660_v18 = vunpack.c.h.bf16 %v1292_v16  ;;  %v695_v53 = vld [vmem:[%s1411_s7] sm:$0xf] }
  0x14   : > { %v500_v28 = vrot.slane %v486_v24, %v1306_v25  ;;  %v524_v31 = vrot.slane %v510_v26, %v1306_v25  ;;  %v753_v55 = vsel %vm554_vm2, %v695_v53, 0  ;;  %v657_v56 = vld [vmem:[%s1409_s5] sm:$0x1] }
  0x15   : > { %v1159_v19 = vpack.i.bf16 %v660_v18, %v659_v17  ;;  %v661_v57 = vunpack.c.l.bf16 %v657_v56  ;;  %v1065_v0 = vld [vmem:[%s1410_s6] ss:$0 sm:$0xff] }
  0x16   : > { %v1064_v2 = vld [vmem:[%s1408_s4] ss:$0 sm:$0xff] }
  0x17   : > { %1160 = vperm.xlu1 %1158, %v1159_v19   ;;  %v675_v59 = vrot.slane %v661_v57, %v1306_v25 }
  0x18   : > { %v480_v6 = vld [vmem:[#allocation2 + $0x7] sm:$0xff]  ;;  %v481_v7 = vld [vmem:[#allocation2 + $0xf] sm:$0xff] }
  0x19   : > { %v503_v8 = vld [vmem:[#allocation2 + $0x8] sm:$0xff]  ;;  %v504_v9 = vld [vmem:[#allocation2 + $0x10] sm:$0xff]  ;;  %v1148_v10 = vpack.i.bf16 %v481_v7, %v480_v6 }
  0x1a   : > { %v1153_v11 = vpack.i.bf16 %v504_v9, %v503_v8 }
  0x1b   : > { %1149 = vperm.xlu0 %1147, %v1148_v10  }
  0x1f   : > { %1154 = vperm.xlu0 %1147, %v1153_v11  }
  0x92   : > { %v1161_v58 = vpop.permute.xlu1 %1160 }
  0x93   : > { %v1162_v60 = vunpack.i.l.bf16 %v1161_v58  ;;  %v1163_v61 = vunpack.i.h.bf16 %v1161_v58  ;;  %v927_v58 = vld [vmem:[%s1415_s11] sm:$0xf] }
  0x95   : > { %v676_v62 = vmul.f32 %v1162_v60, %v675_v59  ;;  %v677_v7 = vmul.f32 %v1163_v61, %v675_v59  ;;  %v941_v59 = vsel %vm554_vm2, %v927_v58, 0 }
  0x96   : > { %v1150_v27 = vpop.permute.xlu0 %1149 }
  0x97   : > { %v1152_v29 = vunpack.i.h.bf16 %v1150_v27  ;;  %v1151_v30 = vunpack.i.l.bf16 %v1150_v27  ;;  %v685_v8 = vadd.f32 %v1065_v0, %v676_v62  ;;  %v686_v19 = vadd.f32 %v1065_v0, %v677_v7  ;;  %v1073_v62 = vld [vmem:[%s1414_s10] ss:$0 sm:$0xff] }
  0x99   : > { %v502_v35 = vmul.f32 %v1152_v29, %v500_v28  ;;  %v501_v36 = vmul.f32 %v1151_v30, %v500_v28 }
  0x9a   : > { %v1155_v32 = vpop.permute.xlu0 %1154 }
  0x9b   : > { %v1157_v33 = vunpack.i.h.bf16 %v1155_v32  ;;  %v1156_v34 = vunpack.i.l.bf16 %v1155_v32 }
  0x9d   : > { %v526_v37 = vmul.f32 %v1157_v33, %v524_v31  ;;  %v525_v38 = vmul.f32 %v1156_v34, %v524_v31  ;;  %v1070_v33 = vld [vmem:[%s1413_s9 + $0x4] sm:$0xf]  ;;  %v811_v34 = vld [vmem:[%s1413_s9] sm:$0xf] }
  0x9f   : > { %v527_v40 = vadd.f32 %v525_v38, %v501_v36  ;;  %v528_v41 = vadd.f32 %v526_v37, %v502_v35  ;;  %v822_v35 = vsel %vm554_vm2, %v1070_v33, 0  ;;  %v869_v36 = vsel %vm554_vm2, %v811_v34, 0 }
  0xa1   : > { %v536_v42 = vadd.f32 %v1060_v39, %v527_v40  ;;  %v537_v43 = vadd.f32 %v1060_v39, %v528_v41  ;;  %v1069_v39 = vld [vmem:[%s1412_s8] ss:$0 sm:$0xff] }
  0xa3   : > { %v538_v44 = vmax.f32 %v536_v42, 0.0  ;;  %v539_v45 = vmax.f32 %v537_v43, 0.0 }
  0xa5   : > { %540 = vst.msk [vmem:[#allocation2 + $0x8] sm:$0xff] %vm473_vm0, %v538_v44  ;;  %541 = vst.msk [vmem:[#allocation2 + $0x10] sm:$0xff] %vm473_vm0, %v539_v45 }
  0xac   : > { %v546_v46 = vld [vmem:[#allocation2 + $0x8] sm:$0xff]  ;;  %v547_v47 = vld [vmem:[#allocation2 + $0x10] sm:$0xff] }
  0xad   : > { %v542_v48 = vld [vmem:[#allocation2 + $0x7] sm:$0xff]  ;;  %v550_v49 = vpack.c.bf16 %v547_v47, %v546_v46  ;;  %v543_v50 = vld [vmem:[#allocation2 + $0xf] sm:$0xff] }
  0xae   : > { %v545_v51 = vpack.c.bf16 %v543_v50, %v542_v48 }
  0xaf   : > { %1097 = vmatmul.mubr.msk.bf16.vlgmr.msra.gmra.mxu0 %vm473_vm0, %v550_v49 }
  0xb0   : > { %1103 = vmatmul.mubr.msk.bf16.vlgmr.msra.gmra.mxu1 %vm473_vm0, %v545_v51  ;;  %1108 = vmatprep.mubr.msk.bf16.mxu0 %vm1174_vm3, %v1173_v3 }
  0xb1   : > { %1114 = vmatprep.mubr.msk.bf16.mxu1 %vm1174_vm3, %v1173_v3  ;;  %1107 = vmatpush3.bf16.msra.mxu0 %v706_v54 }
  0xb2   : > { %1113 = vmatpush3.bf16.msra.mxu1 %v753_v55  ;;  %1118 = vmatprep.subr.bf16.mxu0 %v1173_v3 }
  0xb3   : > { %1124 = vmatprep.subr.bf16.mxu1 %v1173_v3 }
 0x16f   : > { %v592_v63 = vpop.f32.mrf.mxu0 }
 0x170   : > { %v639_v1 = vpop.f32.mrf.mxu1 }
 0x171   : > { %v640_v4 = vadd.f32 %v639_v1, %v592_v63  ;;  %v1098_v5 = vpop.f32.mrf.mxu0 }
 0x172   : > { %v1104_v6 = vpop.f32.mrf.mxu1 }
 0x173   : > { %v653_v9 = vadd.f32 %v1064_v2, %v640_v4  ;;  %v595_v10 = vpop.f32.mrf.mxu0 }
 0x174   : > { %v642_v11 = vpop.f32.mrf.mxu1 }
 0x175   : > { %v655_v12 = vmax.f32 %v653_v9, 0.0  ;;  %v643_v13 = vadd.f32 %v642_v11, %v595_v10  ;;  %v1099_v14 = vpop.f32.mrf.mxu0 }
 0x176   : > { %v1105_v15 = vpop.f32.mrf.mxu1 }
 0x177   : > { %v1341_v20 = vadd.f32 %v685_v8, %v655_v12  ;;  %v654_v21 = vadd.f32 %v1064_v2, %v643_v13 }
 0x179   : > { %v689_v22 = vmax.f32 %v1341_v20, 0.0  ;;  %v656_v23 = vmax.f32 %v654_v21, 0.0  ;;  %v1075_v20 = vld [vmem:[#allocation4] ss:$0 sm:$0xff] }
 0x17b   : > { %691 = vst.msk [vmem:[#allocation2 + $0x8] sm:$0xff] %vm473_vm0, %v689_v22  ;;  %v1347_v24 = vadd.f32 %v686_v19, %v656_v23  ;;  %v929_v19 = vld [vmem:[#allocation3] sm:$0x1] }
 0x17c   : > { %v930_v21 = vunpack.c.l.bf16 %v929_v19 }
 0x17d   : > { %v690_v26 = vmax.f32 %v1347_v24, 0.0 }
 0x17e   : > { %v934_v23 = vrot.slane %v930_v21, %v1306_v25 }
 0x17f   : > { %692 = vst.msk [vmem:[#allocation2 + $0x10] sm:$0xff] %vm473_vm0, %v690_v26 }
 0x182   : > { %v697_v27 = vld [vmem:[#allocation2 + $0x8] sm:$0xff] }
 0x183   : > { %v693_v29 = vld [vmem:[#allocation2 + $0x6] sm:$0xff] }
 0x186   : > { %v698_v28 = vld [vmem:[#allocation2 + $0x10] sm:$0xff] }
 0x187   : > { %v694_v30 = vld [vmem:[#allocation2 + $0xe] sm:$0xff]  ;;  %v701_v31 = vpack.c.bf16 %v698_v28, %v697_v27  ;;  %v935_v27 = vmul.f32 %v934_v23, %v659_v17 }
 0x188   : > { %v696_v32 = vpack.c.bf16 %v694_v30, %v693_v29 }
 0x189   : > { %1109 = vmatmul.mubr.msk.bf16.vlgmr.msra.gmra.mxu0 %vm473_vm0, %v701_v31 }
 0x18a   : > { %1115 = vmatmul.mubr.msk.bf16.vlgmr.msra.gmra.mxu1 %vm473_vm0, %v696_v32  ;;  %1120 = vmatprep.mubr.msk.bf16.mxu0 %vm1174_vm3, %v1173_v3 }
 0x18b   : > { %1126 = vmatprep.mubr.msk.bf16.mxu1 %vm1174_vm3, %v1173_v3  ;;  %1119 = vmatpush3.bf16.msra.mxu0 %v822_v35 }
 0x18c   : > { %1125 = vmatpush3.bf16.msra.mxu1 %v869_v36  ;;  %1130 = vmatprep.subr.bf16.mxu0 %v1173_v3 }
 0x249   : > { %v742_v37 = vpop.f32.mrf.mxu0 }
 0x24a   : > { %v789_v38 = vpop.f32.mrf.mxu1 }
 0x24b   : > { %v790_v40 = vadd.f32 %v789_v38, %v742_v37  ;;  %v1110_v41 = vpop.f32.mrf.mxu0 }
 0x24c   : > { %v1116_v42 = vpop.f32.mrf.mxu1 }
 0x24d   : > { %v803_v43 = vadd.f32 %v1069_v39, %v790_v40  ;;  %v745_v44 = vpop.f32.mrf.mxu0 }
 0x24e   : > { %v792_v45 = vpop.f32.mrf.mxu1 }
 0x24f   : > { %v805_v46 = vmax.f32 %v803_v43, 0.0  ;;  %v793_v47 = vadd.f32 %v792_v45, %v745_v44  ;;  %v1111_v48 = vpop.f32.mrf.mxu0 }
 0x250   : > { %v1117_v49 = vpop.f32.mrf.mxu1 }
 0x251   : > { %807 = vst.msk [vmem:[#allocation2 + $0x8] sm:$0xff] %vm473_vm0, %v805_v46  ;;  %v804_v50 = vadd.f32 %v1069_v39, %v793_v47 }
 0x253   : > { %v806_v51 = vmax.f32 %v804_v50, 0.0 }
 0x255   : > { %808 = vst.msk [vmem:[#allocation2 + $0x10] sm:$0xff] %vm473_vm0, %v806_v51 }
 0x258   : > { %v813_v52 = vld [vmem:[#allocation2 + $0x8] sm:$0xff] }
 0x259   : > { %v809_v54 = vld [vmem:[#allocation2 + $0x6] sm:$0xff] }
 0x25c   : > { %v814_v53 = vld [vmem:[#allocation2 + $0x10] sm:$0xff] }
 0x25d   : > { %v810_v55 = vld [vmem:[#allocation2 + $0xe] sm:$0xff]  ;;  %v817_v56 = vpack.c.bf16 %v814_v53, %v813_v52 }
 0x25e   : > { %v812_v57 = vpack.c.bf16 %v810_v55, %v809_v54 }
 0x25f   : > { %1121 = vmatmul.mubr.msk.bf16.vlgmr.msra.gmra.mxu0 %vm473_vm0, %v817_v56 }
 0x260   : > { %1127 = vmatmul.mubr.msk.bf16.vlgmr.msra.gmra.mxu1 %vm473_vm0, %v812_v57  ;;  %1132 = vmatprep.mubr.msk.bf16.mxu0 %vm1174_vm3, %v1173_v3 }
 0x261   : > { %1131 = vmatpush3.bf16.msra.mxu0 %v941_v59 }
 0x31f   : > { %v858_v60 = vpop.f32.mrf.mxu0 }
 0x320   : > { %v905_v61 = vpop.f32.mrf.mxu1 }
 0x321   : > { %v906_v63 = vadd.f32 %v905_v61, %v858_v60  ;;  %v1122_v0 = vpop.f32.mrf.mxu0 }
 0x322   : > { %v1128_v1 = vpop.f32.mrf.mxu1 }
 0x323   : > { %v919_v2 = vadd.f32 %v1073_v62, %v906_v63  ;;  %v861_v4 = vpop.f32.mrf.mxu0 }
 0x324   : > { %v908_v5 = vpop.f32.mrf.mxu1 }
 0x325   : > { %v921_v3 = vmax.f32 %v919_v2, 0.0  ;;  %v909_v6 = vadd.f32 %v908_v5, %v861_v4  ;;  %v1123_v7 = vpop.f32.mrf.mxu0 }
 0x326   : > { %v1129_v8 = vpop.f32.mrf.mxu1 }
 0x327   : > { %v920_v9 = vadd.f32 %v1073_v62, %v909_v6  ;;  %v923_v10 = vadd.f32 %v921_v3, %v689_v22  ;;  %v936_v22 = vmul.f32 %v934_v23, %v660_v18 }
 0x329   : > { %v922_v11 = vmax.f32 %v920_v9, 0.0  ;;  %v925_v13 = vmax.f32 %v923_v10, 0.0 }
 0x32b   : > { %v924_v12 = vadd.f32 %v922_v11, %v690_v26 }
 0x32d   : > { %v926_v14 = vmax.f32 %v924_v12, 0.0 }
 0x32f   : > { %v928_v15 = vpack.c.bf16 %v926_v14, %v925_v13 }
 0x331   : > { %1133 = vmatmul.mubr.msk.bf16.vlgmr.msra.gmra.mxu0 %vm473_vm0, %v928_v15 }
 0x3f1   : > { %v977_v28 = vpop.f32.mrf.mxu0 }
 0x3f2   : > { %v978_v29 = vadd.f32 %v977_v28, %v935_v27 }
 0x3f3   : > { %v1134_v24 = vpop.f32.mrf.mxu0 }
 0x3f4   : > { %v991_v26 = vadd.f32 %v1075_v20, %v978_v29 }
 0x3f5   : > { %v980_v30 = vpop.f32.mrf.mxu0 }
 0x3f6   : > { %993 = vst.msk [vmem:[%s471_s23] sm:$0xff] %vm477_vm1, %v991_v26  ;;  %v981_v25 = vadd.f32 %v980_v30, %v936_v22 }
 0x3f7   : > { %v1135_v31 = vpop.f32.mrf.mxu0 }
 0x3f8   : > { %v992_v32 = vadd.f32 %v1075_v20, %v981_v25 }
 0x3fa   : > { %994 = vst.msk [vmem:[%s471_s23 + $0x8] sm:$0xff] %vm477_vm1, %v992_v32 }
 0x3fb PF: > { %s28_s17 = sadd.s32 1, %s1170_s17  }
 0x3fc   : > { %p25_p4 = scmp.ge.s32.totalorder %s28_s17, 4  }
 0x3fe   :  { %27 = sbr.rel (!%p25_p4) target bundleno = 3 (0x3), region = 110 }

</bundles_post_ra>
